<compile_context>
chip_gen: v6e
topology: v6e:2x2x1
jax: 0.10.0
libtpu: 0.0.40
codegen_flags: <defaults>
</compile_context>

<pallas_src>
import functools

import jax
import jax.numpy as jnp
from jax.experimental import pallas as pl
from jax.experimental.pallas import tpu as pltpu


def _target_pos_loss_kernel(xy_ref, tgt_ref, o_ref, *, bb):
    # xy_ref : (2, BB, Np) VMEM block — row 0 = x positions, row 1 = y positions
    # tgt_ref: (2, Bp, 1)  VMEM, resident across the grid — per-batch target (x, y)
    # o_ref  : (BB, Np)    VMEM block — L2 distance for BB batch rows x Np samples
    start = pl.multiple_of(pl.program_id(0) * bb, bb)
    tx = tgt_ref[0, pl.ds(start, bb), :]          # (BB, 1), lane-broadcast below
    ty = tgt_ref[1, pl.ds(start, bb), :]          # (BB, 1)
    dx = xy_ref[0] - tx                           # (BB, Np)
    dy = xy_ref[1] - ty                           # (BB, Np)
    o_ref[...] = jnp.sqrt(dx * dx + dy * dy)


def _pick_batch_block(B, Np, *, cap=256, vmem_budget_bytes=12 * 1024 * 1024):
    """Pick per-grid-step batch block BB (multiple of 8).

    * Grow BB until `cap` or the VMEM budget binds: working set is ~24 bytes
      per (batch, lane) element (double-buffered f32 xy input + f32 output);
      12 MiB stays under the default scoped-VMEM limit on every generation
      (v5e 16 MiB, v6e/v7x 32 MiB) so no vmem_limit_bytes override is needed.
    * If the whole batch fits one block but is big enough to split, use ~2
      blocks so the "parallel" batch axis can shard across v7x's two
      TensorCores (neutral on single-TC v5e/v6e).
    """
    def _round8(v):
        return max(8, ((v + 7) // 8) * 8)

    max_bb = max(8, (vmem_budget_bytes // (24 * Np)) // 8 * 8)
    bb = min(cap, max_bb)
    b8 = _round8(B)
    if b8 <= bb:                       # whole batch fits in a single block
        bb = _round8((B + 1) // 2) if B >= 16 else b8
    return bb


def target_pos_at_time_loss(x, target_pos, target_time, *, batch_block=None):
    """x: (B, N, T, C>=2); target_pos: (B, 2); target_time: (B,) int. Returns (B, N) f32."""
    B, N, T, C = x.shape
    assert target_pos.shape == (B, 2)
    assert target_time.shape == (B,)

    # 1) Channel-slice + cast BEFORE the gather (2 channels instead of C), then
    #    gather the single per-batch time slice (tiny: B*N*2 elements out).
    x2 = x[..., :2].astype(jnp.float32)                         # (B, N, T, 2)
    tt = target_time.astype(jnp.int32)
    idx = jnp.broadcast_to(tt[:, None, None, None], (B, N, 1, 2))
    xy = jnp.take_along_axis(x2, idx, axis=2)[:, :, 0, :]       # (B, N, 2)

    # 2) Lane-dense layout on the tiny gathered tensor only: samples N on the
    #    lane axis (padded to a multiple of 128 -> unmasked stores), a big
    #    block of batch rows per grid step to amortize per-step overhead.
    Np = 128 * pl.cdiv(N, 128)
    BB = batch_block if batch_block is not None else _pick_batch_block(B, Np)
    assert BB % 8 == 0
    Bp = BB * pl.cdiv(B, BB)

    xy_t = jnp.transpose(xy, (2, 0, 1))                         # (2, B, N)
    tgt_t = jnp.transpose(target_pos.astype(jnp.float32), (1, 0))[:, :, None]  # (2, B, 1)
    if (Bp, Np) != (B, N):                                      # conditional pads
        xy_t = jnp.pad(xy_t, ((0, 0), (0, Bp - B), (0, Np - N)))
        if Bp != B:
            tgt_t = jnp.pad(tgt_t, ((0, 0), (0, Bp - B), (0, 0)))

    out = pl.pallas_call(
        functools.partial(_target_pos_loss_kernel, bb=BB),
        grid=(Bp // BB,),
        in_specs=[
            pl.BlockSpec((2, BB, Np), lambda i: (0, i, 0)),     # xy slab (blocked)
            pl.BlockSpec((2, Bp, 1), lambda i: (0, 0, 0)),      # targets (resident)
        ],
        out_specs=pl.BlockSpec((BB, Np), lambda i: (i, 0)),
        out_shape=jax.ShapeDtypeStruct((Bp, Np), jnp.float32),
        compiler_params=pltpu.CompilerParams(dimension_semantics=("parallel",)),
    )(xy_t, tgt_t)

    if (Bp, Np) != (B, N):                                      # conditional slice
        out = out[:B, :N]
    return out                                                  # (B, N)


if __name__ == "__main__":
    key = jax.random.PRNGKey(0)
    k_x, k_tgt = jax.random.split(key)

    B, N, T, C = 2, 8, 8, 6
    x = jax.random.normal(k_x, (B, N, T, C), dtype=jnp.float32)
    target_pos = jax.random.normal(k_tgt, (B, 2), dtype=jnp.float32)
    target_time = jnp.array([3, 5], dtype=jnp.int32)

    fn = jax.jit(target_pos_at_time_loss)
    loss = jax.block_until_ready(fn(x, target_pos, target_time))

    # Pure-JAX reference of the PyTorch forward.
    x_pos = x[jnp.arange(B), :, target_time, :2]                 # (B, N, 2)
    expected = jnp.linalg.norm(x_pos - target_pos[:, None, :], axis=-1)
    assert loss.shape == (B, N), loss.shape
    assert jnp.allclose(loss, expected, atol=1e-5, rtol=1e-5)

    print("KERNEL_OK")
</pallas_src>

<mosaic_0001>
module attributes {stable_mosaic.version = 11 : i64} {
  func.func @_target_pos_loss_kernel(%arg0: i32, %arg1: memref<2x8x128xf32, #tpu.memory_space<vmem>>, %arg2: memref<2x8x1xf32, #tpu.memory_space<vmem>>, %arg3: memref<8x128xf32, #tpu.memory_space<vmem>>) attributes {dimension_semantics = [#tpu.dimension_semantics<parallel>], iteration_bounds = array<i64: 1>, scalar_prefetch = 0 : i64, scratch_operands = 0 : i64, tpu.core_type = #tpu.core_type<tc>, window_params = [{transform_indices = @transform_0, window_bounds = array<i64: 2, 8, 128>}, {pipeline_mode = #tpu.pipeline_mode<synchronous>, transform_indices = @transform_1, window_bounds = array<i64: 2, 8, 1>}, {transform_indices = @transform_2, window_bounds = array<i64: 8, 128>}]} {
    %c8_i32 = arith.constant 8 : i32
    %0 = arith.muli %arg0, %c8_i32 : i32
    %1 = tpu.assume_multiple %0, 8 : i32
    %c0 = arith.constant 0 : index
    %2 = arith.index_cast %1 : i32 to index
    %c0_0 = arith.constant 0 : index
    %3 = vector.load %arg2[%c0, %2, %c0_0] : memref<2x8x1xf32, #tpu.memory_space<vmem>>, vector<1x8x1xf32>
    %4 = vector.shape_cast %3 : vector<1x8x1xf32> to vector<8x1xf32>
    %c1 = arith.constant 1 : index
    %5 = arith.index_cast %1 : i32 to index
    %c0_1 = arith.constant 0 : index
    %6 = vector.load %arg2[%c1, %5, %c0_1] : memref<2x8x1xf32, #tpu.memory_space<vmem>>, vector<1x8x1xf32>
    %7 = vector.shape_cast %6 : vector<1x8x1xf32> to vector<8x1xf32>
    %c0_2 = arith.constant 0 : index
    %c0_3 = arith.constant 0 : index
    %c0_4 = arith.constant 0 : index
    %8 = vector.load %arg1[%c0_2, %c0_3, %c0_4] : memref<2x8x128xf32, #tpu.memory_space<vmem>>, vector<1x8x128xf32>
    %9 = vector.shape_cast %8 : vector<1x8x128xf32> to vector<8x128xf32>
    %10 = vector.broadcast %4 : vector<8x1xf32> to vector<8x128xf32>
    %11 = arith.subf %9, %10 : vector<8x128xf32>
    %c1_5 = arith.constant 1 : index
    %c0_6 = arith.constant 0 : index
    %c0_7 = arith.constant 0 : index
    %12 = vector.load %arg1[%c1_5, %c0_6, %c0_7] : memref<2x8x128xf32, #tpu.memory_space<vmem>>, vector<1x8x128xf32>
    %13 = vector.shape_cast %12 : vector<1x8x128xf32> to vector<8x128xf32>
    %14 = vector.broadcast %7 : vector<8x1xf32> to vector<8x128xf32>
    %15 = arith.subf %13, %14 : vector<8x128xf32>
    %16 = arith.mulf %11, %11 : vector<8x128xf32>
    %17 = arith.mulf %15, %15 : vector<8x128xf32>
    %18 = arith.addf %16, %17 : vector<8x128xf32>
    %19 = math.sqrt %18 : vector<8x128xf32>
    %c0_8 = arith.constant 0 : index
    %c0_9 = arith.constant 0 : index
    %20 = vector.load %arg3[%c0_8, %c0_9] : memref<8x128xf32, #tpu.memory_space<vmem>>, vector<8x128xf32>
    tpu.vector_store %arg3[%c0_8, %c0_9], %19 {strides = array<i32>} : memref<8x128xf32, #tpu.memory_space<vmem>>, vector<8x128xf32>,
    return
  }
  func.func @transform_0(%arg0: i32) -> (i32, i32, i32) {
    %c0_i32 = arith.constant 0 : i32
    %c0_i32_0 = arith.constant 0 : i32
    %c0_i32_1 = arith.constant 0 : i32
    return %c0_i32, %arg0, %c0_i32_0 : i32, i32, i32
  }
  func.func @transform_1(%arg0: i32) -> (i32, i32, i32) {
    %c0_i32 = arith.constant 0 : i32
    %c0_i32_0 = arith.constant 0 : i32
    %c0_i32_1 = arith.constant 0 : i32
    %c0_i32_2 = arith.constant 0 : i32
    return %c0_i32, %c0_i32_0, %c0_i32_1 : i32, i32, i32
  }
  func.func @transform_2(%arg0: i32) -> (i32, i32) {
    %c0_i32 = arith.constant 0 : i32
    %c0_i32_0 = arith.constant 0 : i32
    return %arg0, %c0_i32 : i32, i32
  }
}

</mosaic_0001>

<bundles_post_ra>
// kernel: target_pos_at_time_loss.1
= control target key start
LH: loop header
LB: loop body
LE: loop exit
PB: predicated region body
PF: predicated region fallthrough
CT: control target
= control target key end

     0   :  { %v54_v0 = vmov 0   ;;  %s85_s1 = inlined_call_operand.vmem [shape: f32[2,8,1], index: 1, kind: input, shape index: {}]   ;;  %s86_s0 = inlined_call_operand.vmem [shape: f32[2,8,128], index: 0, kind: input, shape index: {}]   ;;  %s87_s2 = inlined_call_operand.vmem [shape: f32[8,128], index: 2, kind: output, shape index: {}]  }
   0x1   :  { %51 = vset.pattern.permute.xlu0 %v54_v0  ;;  %v13_v1 = vld [vmem:[%s85_s1] sm:$0xff]  ;;  %v48_v2 = vld [vmem:[%s85_s1 + $0x8] sm:$0xff] }
   0x2   :  { %20 = vperm.xlu0 %51, %v13_v1   ;;  %v17_v4 = vld [vmem:[%s86_s0] sm:$0xff]  ;;  %v49_v5 = vld [vmem:[%s86_s0 + $0x8] sm:$0xff] }
   0x6   :  { %28 = vperm.xlu0 %51, %v48_v2  }
  0x7d   :  { %v21_v3 = vpop.permute.xlu0 %20 }
  0x7e   :  { %v23_v6 = vsub.f32 %v17_v4, %v21_v3 }
  0x80   :  { %v32_v9 = vmul.f32 %v23_v6, %v23_v6 }
  0x81   :  { %v29_v7 = vpop.permute.xlu0 %28 }
  0x82   :  { %v31_v8 = vsub.f32 %v49_v5, %v29_v7 }
  0x84   :  { %v33_v10 = vmul.f32 %v31_v8, %v31_v8 }
  0x86   :  { %v34_v11 = vadd.f32 %v33_v10, %v32_v9 }
  0x88   :  { %52 = vrsqrt.f32 %v34_v11  ;;  %vm37_vm0 = vcmp.eq.f32.partialorder %v34_v11, inf  ;;  %v40_v14 = vand.u32 2147483648, %v34_v11  ;;  %vm39_vm1 = vcmp.eq.f32.partialorder %v34_v11, 0.0 }
  0x95   :  { %v53_v12 = vpop.eup %52 }
  0x96   :  { %v36_v13 = vmul.f32 %v53_v12, %v34_v11 }
  0x98   :  { %v38_v15 = vsel %vm37_vm0, %v34_v11, %v36_v13 }
  0x99   :  { %v41_v16 = vsel %vm39_vm1, %v40_v14, %v38_v15 }
  0x9a   :  { %42 = vst [vmem:[%s87_s2] sm:$0xff] %v41_v16 }

</bundles_post_ra>
